<compile_context>
chip_gen: v5e
topology: v5e:2x2
jax: 0.10.0
libtpu: 0.0.40
codegen_flags: <defaults>
</compile_context>

<pallas_src>
import jax
import jax.numpy as jnp
from jax.experimental import pallas as pl
from jax.experimental.pallas import tpu as pltpu


def _rezero_kernel(a_ref, x_ref, r_ref, o_ref):
    # a_ref: (bR, 1) per-row alpha column (or (1, bL) row for 2-D inputs);
    # x/r/o: (bR, bL) lane-dense tiles.  One VPU broadcast-FMA per vreg;
    # the kernel stays DMA-bound on every TPU generation.
    o_ref[...] = x_ref[...] + a_ref[...] * r_ref[...]


def _gen_params():
    """(target bytes per streamed ref, vmem_limit_bytes) scaled by TPU gen."""
    kind = ""
    try:
        kind = jax.devices()[0].device_kind.lower()
    except Exception:  # defensive; the defaults below are safe everywhere
        pass
    if "v7" in kind or "7x" in kind:
        # 3.2 TB/s HBM: big tiles to amortize ~0.35us/step, but only 64 MiB
        # physical VMEM -> cap the scoped limit well below it.
        return 4 << 20, 48 << 20
    if "v6" in kind:
        # 1.4 TB/s HBM, 128 MiB physical VMEM: plenty of headroom.
        return 4 << 20, 64 << 20
    # v5e / unknown: 0.82 TB/s; default scoped limit is only 16 MiB, so raise
    # it explicitly.  ~2 MiB tiles already sit at the roofline plateau.
    return 2 << 20, 32 << 20


def _pick_blocks(R, L, itemsize, target_bytes):
    """Pick a tiling-legal, lane-dense block of roughly target_bytes per ref."""
    # Sublane packing unit: 8 rows for 32-bit, 16 for bf16, 32 for int8/fp8.
    sub = 8 * max(1, 4 // itemsize)
    budget = max(1, target_bytes // itemsize)      # elements per ref
    lane_pad = -(-L // 128) * 128                  # VMEM-padded lane extent

    if sub * lane_pad <= budget:
        # Full rows fit: one contiguous DMA per row-slab, no lane grid axis.
        bL = L
        rows = max(sub, (budget // lane_pad) // sub * sub)
    else:
        # Must tile lanes; keep the block a 128 multiple so stores stay dense
        # (only the trailing partial block, if L % bL != 0, is masked).
        bL = max(128, min(budget // sub, L) // 128 * 128)
        rows = max(sub, (budget // bL) // sub * sub)
    bR = min(R, rows)

    # Keep >=2 blocks when possible so both v7x TensorCores get work
    # (costs at most one extra ~0.35us step on single-TC v5e/v6e).
    if pl.cdiv(R, bR) * pl.cdiv(L, bL) == 1 and R >= 2 * sub:
        half = (R + 1) // 2
        bR = ((half + sub - 1) // sub) * sub

    return bR, bL


def rezero(inputs: jax.Array, result: jax.Array, alpha: jax.Array,
           *, donate_inputs: bool = False) -> jax.Array:
    """out = inputs + alpha[None, :, None, ...] * result  (ReZero forward)."""
    assert result.shape == inputs.shape and result.dtype == inputs.dtype
    assert inputs.ndim >= 2
    dims = [int(d) for d in inputs.shape]
    N, C = dims[0], dims[1]
    assert alpha.shape == (C,)
    # TODO(synk): for bf16 activations PyTorch keeps the fp32 parameter in the
    # multiply; here alpha is cast to the activation dtype (exact for f32).
    a_dtype = inputs.dtype
    itemsize = jnp.dtype(inputs.dtype).itemsize
    ndim = inputs.ndim

    if ndim == 2:
        # Channel axis is the lane axis; alpha broadcasts as a (1, C) row.
        R, L = N, C
        x2, r2 = inputs, result
        a_arr = alpha.astype(a_dtype).reshape(1, C)
        alpha_on_rows = False
    else:
        # Lane-dense 2-D view: one row per (n, c, leading-spatial...), the
        # largest 128-multiple trailing product on the lane axis.
        trailing = [1] * (ndim + 1)
        for k in range(ndim - 1, -1, -1):
            trailing[k] = trailing[k + 1] * dims[k]
        split = 2
        if trailing[2] % 128 != 0:
            for k in range(3, ndim):
                if trailing[k] % 128 == 0:
                    split = k
                    break
            # else: fall back to the full spatial product (masked trailing
            # lanes on the store path, still correct).
        L = trailing[split]
        prefix = trailing[2] // L          # prod(dims[2:split]); 1 if split==2
        R = N * C * prefix
        x2 = inputs.reshape(R, L)
        r2 = result.reshape(R, L)
        # Row r belongs to channel (r // prefix) % C.
        a_arr = jnp.tile(jnp.repeat(alpha.astype(a_dtype), prefix), N).reshape(R, 1)
        alpha_on_rows = True

    target_bytes, vmem_limit = _gen_params()
    bR, bL = _pick_blocks(R, L, itemsize, target_bytes)

    if bL == L:
        # Full-row tiles: 1-D grid, fully contiguous DMAs per step.
        grid = (pl.cdiv(R, bR),)
        data_spec = pl.BlockSpec((bR, L), lambda i: (i, 0))
        if alpha_on_rows:
            alpha_spec = pl.BlockSpec((bR, 1), lambda i: (i, 0))
        else:
            alpha_spec = pl.BlockSpec((1, L), lambda i: (0, 0))
        dim_sem = ("parallel",)
    else:
        # Lane axis innermost so the (i, 0) alpha block is not re-fetched.
        grid = (pl.cdiv(R, bR), pl.cdiv(L, bL))
        data_spec = pl.BlockSpec((bR, bL), lambda i, j: (i, j))
        if alpha_on_rows:
            alpha_spec = pl.BlockSpec((bR, 1), lambda i, j: (i, 0))
        else:
            alpha_spec = pl.BlockSpec((1, bL), lambda i, j: (0, j))
        dim_sem = ("parallel", "parallel")

    call_kwargs = {}
    if donate_inputs:
        # Let XLA reuse `inputs`' HBM buffer for the output (x2 is arg 1).
        call_kwargs["input_output_aliases"] = {1: 0}

    out2 = pl.pallas_call(
        _rezero_kernel,
        out_shape=jax.ShapeDtypeStruct((R, L), inputs.dtype),
        grid=grid,
        in_specs=[alpha_spec, data_spec, data_spec],
        out_specs=data_spec,
        compiler_params=pltpu.CompilerParams(
            dimension_semantics=dim_sem,
            vmem_limit_bytes=vmem_limit,
        ),
        cost_estimate=pl.CostEstimate(
            flops=2 * R * L,
            bytes_accessed=(3 * R * L + a_arr.size) * itemsize,
            transcendentals=0,
        ),
        **call_kwargs,
    )(a_arr, x2, r2)

    return out2.reshape(inputs.shape)


if __name__ == "__main__":
    key = jax.random.PRNGKey(0)
    k1, k2 = jax.random.split(key)

    N, C, H, W = 2, 4, 16, 16
    x = jax.random.normal(k1, (N, C, H, W), dtype=jnp.float32)
    r = jax.random.normal(k2, (N, C, H, W), dtype=jnp.float32)

    # nn.Parameter(torch.ones(out_size)) * initial_value; made distinct per
    # channel so the per-channel broadcast is actually exercised.
    initial_value = 0.5
    alpha = jnp.ones((C,), dtype=jnp.float32) * initial_value
    alpha = alpha * (1.0 + 0.25 * jnp.arange(C, dtype=jnp.float32))

    out = rezero(x, r, alpha)
    out = jax.block_until_ready(out)

    # Reference check (plain JAX, mirrors the PyTorch broadcasting).
    ref = x + alpha[None, :, None, None] * r
    assert out.shape == x.shape and out.dtype == x.dtype
    assert jnp.allclose(out, ref, atol=1e-6, rtol=1e-6)

    print("KERNEL_OK")
</pallas_src>

<mosaic_0001>
module attributes {stable_mosaic.version = 11 : i64} {
  func.func @_rezero_kernel(%arg0: i32, %arg1: memref<8x1xf32, #tpu.memory_space<vmem>>, %arg2: memref<8x256xf32, #tpu.memory_space<vmem>>, %arg3: memref<8x256xf32, #tpu.memory_space<vmem>>, %arg4: memref<8x256xf32, #tpu.memory_space<vmem>>) attributes {dimension_semantics = [#tpu.dimension_semantics<parallel>], iteration_bounds = array<i64: 1>, scalar_prefetch = 0 : i64, scratch_operands = 0 : i64, tpu.core_type = #tpu.core_type<tc>, window_params = [{transform_indices = @transform_0, window_bounds = array<i64: 8, 1>}, {transform_indices = @transform_1, window_bounds = array<i64: 8, 256>}, {transform_indices = @transform_2, window_bounds = array<i64: 8, 256>}, {transform_indices = @transform_3, window_bounds = array<i64: 8, 256>}]} {
    %c0 = arith.constant 0 : index
    %c0_0 = arith.constant 0 : index
    %0 = vector.load %arg2[%c0, %c0_0] : memref<8x256xf32, #tpu.memory_space<vmem>>, vector<8x256xf32>
    %c0_1 = arith.constant 0 : index
    %c0_2 = arith.constant 0 : index
    %1 = vector.load %arg1[%c0_1, %c0_2] : memref<8x1xf32, #tpu.memory_space<vmem>>, vector<8x1xf32>
    %c0_3 = arith.constant 0 : index
    %c0_4 = arith.constant 0 : index
    %2 = vector.load %arg3[%c0_3, %c0_4] : memref<8x256xf32, #tpu.memory_space<vmem>>, vector<8x256xf32>
    %3 = vector.broadcast %1 : vector<8x1xf32> to vector<8x256xf32>
    %4 = arith.mulf %3, %2 : vector<8x256xf32>
    %5 = arith.addf %0, %4 : vector<8x256xf32>
    %c0_5 = arith.constant 0 : index
    %c0_6 = arith.constant 0 : index
    %6 = vector.load %arg4[%c0_5, %c0_6] : memref<8x256xf32, #tpu.memory_space<vmem>>, vector<8x256xf32>
    tpu.vector_store %arg4[%c0_5, %c0_6], %5 {strides = array<i32>} : memref<8x256xf32, #tpu.memory_space<vmem>>, vector<8x256xf32>,
    return
  }
  func.func @transform_0(%arg0: i32) -> (i32, i32) {
    %c0_i32 = arith.constant 0 : i32
    %c0_i32_0 = arith.constant 0 : i32
    return %arg0, %c0_i32 : i32, i32
  }
  func.func @transform_1(%arg0: i32) -> (i32, i32) {
    %c0_i32 = arith.constant 0 : i32
    %c0_i32_0 = arith.constant 0 : i32
    return %arg0, %c0_i32 : i32, i32
  }
  func.func @transform_2(%arg0: i32) -> (i32, i32) {
    %c0_i32 = arith.constant 0 : i32
    %c0_i32_0 = arith.constant 0 : i32
    return %arg0, %c0_i32 : i32, i32
  }
  func.func @transform_3(%arg0: i32) -> (i32, i32) {
    %c0_i32 = arith.constant 0 : i32
    %c0_i32_0 = arith.constant 0 : i32
    return %arg0, %c0_i32 : i32, i32
  }
}

</mosaic_0001>

<bundles_post_ra>
// kernel: tpu_custom_call.1
= control target key start
LH: loop header
LB: loop body
LE: loop exit
PB: predicated region body
PF: predicated region fallthrough
CT: control target
= control target key end

     0   :  { %8 = vsyncpa [#allocation3], 0  ;;  %s196_s0 = inlined_call_operand.vmem [shape: f32[8,1], index: 0, kind: input, shape index: {}]   ;;  %s197_s1 = inlined_call_operand.hbm [shape: f32[8,256], index: 1, kind: input, shape index: {}]   ;;  %s198_s2 = inlined_call_operand.hbm [shape: f32[8,256], index: 2, kind: input, shape index: {}]   ;;  %s199_s3 = inlined_call_operand.hbm [shape: f32[8,256], index: 3, kind: output, shape index: {}]  }
   0x1   :  { %9 = vsyncpa [#allocation6], 0 }
   0x2   :  { %10 = vsyncpa [#allocation4], 0  ;;  %s18_s14 = sshll.u32 %s197_s1, 4  ;;  %s160_s15 = smov [#allocation2]   ;;  %s19_s14 = int_to_ptr.hbm [resolvable:$true] %s18_s14 }
   0x3   :  { %s20_s16 = sshll.u32 %s160_s15, 4  ;;  %s29_s19 = sshll.u32 %s198_s2, 4  ;;  %s21_s16 = int_to_ptr.vmem [resolvable:$true] %s20_s16  ;;  %s30_s19 = int_to_ptr.hbm [resolvable:$true] %s29_s19 }
   0x4   :  { %23 = dma.hbm_to_vmem [thread:$0]  %s19_s14, 256, %s21_s16, [#allocation3]  }
   0x5   :  { %s161_s20 = smov [#allocation5]  }
   0x6   :  { %s31_s21 = sshll.u32 %s161_s20, 4  ;;  %s32_s21 = int_to_ptr.vmem [resolvable:$true] %s31_s21 }
   0x7   :  { %34 = dma.hbm_to_vmem [thread:$0]  %s30_s19, 256, %s32_s21, [#allocation6]  }
   0x8   :  { %154 = dma.done.wait [#allocation3], 256  }
   0x9   :  { %155 = vsyncadd [#allocation3], 4294967040 }
   0xa   :  { %156 = dma.done.wait [#allocation6], 256  }
   0xb   :  { %157 = vsyncadd [#allocation6], 4294967040  ;;  %v162_v0 = vmov 0   ;;  %v45_v1 = vld [vmem:[%s196_s0] sm:$0xff]  ;;  %v46_v2 = vld [vmem:[#allocation5] sm:$0xff]  ;;  %s163_s2 = smov [#allocation7]  }
   0xc   :  { %81 = vset.pattern.permute.xlu0 %v162_v0  ;;  %v47_v3 = vld [vmem:[#allocation5 + $0x8] sm:$0xff]  ;;  %v43_v5 = vld [vmem:[#allocation2] sm:$0xff]  ;;  %v44_v6 = vld [vmem:[#allocation2 + $0x8] sm:$0xff]  ;;  %s64_s23 = sshll.u32 %s163_s2, 4  ;;  %s66_s26 = sshll.u32 %s199_s3, 4  ;;  %s65_s23 = int_to_ptr.vmem [resolvable:$true] %s64_s23  ;;  %s67_s26 = int_to_ptr.hbm [resolvable:$true] %s66_s26 }
   0xd   :  { %50 = vperm.xlu0 %81, %v45_v1  }
  0x7f   :  { %v51_v4 = vpop.permute.xlu0 %50 }
  0x80   :  { %v53_v7 = vmul.f32 %v51_v4, %v46_v2  ;;  %v54_v8 = vmul.f32 %v51_v4, %v47_v3 }
  0x82   :  { %v55_v9 = vadd.f32 %v53_v7, %v43_v5  ;;  %v56_v10 = vadd.f32 %v54_v8, %v44_v6 }
  0x84   :  { %57 = vst [vmem:[#allocation7] sm:$0xff] %v55_v9 }
  0x85   :  { %58 = vst [vmem:[#allocation7 + $0x8] sm:$0xff] %v56_v10 }
  0x86   :  { %69 = dma.vmem_to_hbm [thread:$0]  %s65_s23, 256, %s67_s26, [#allocation4]  }
  0x87   :  { %158 = dma.done.wait [#allocation4], 256  }
  0x88   :  { %159 = vsyncadd [#allocation4], 4294967040 }
  0x89   :  { %74 = vsyncpa [#allocation3], 1 }
  0x8a   :  { %75 = vsyncpa [#allocation6], 1 }
  0x8b   :  { %76 = vsyncpa [#allocation4], 1 }

</bundles_post_ra>
